<compile_context>
chip_gen: v7x
topology: tpu7x:2x2x1
jax: 0.10.0
libtpu: 0.0.40
codegen_flags: <defaults>
</compile_context>

<pallas_src>
import jax
import jax.numpy as jnp
from jax.experimental import pallas as pl
from jax.experimental.pallas import tpu as pltpu


def three_layer_kernel(p_ref, x_ref, scores_ref, preds_ref):
    # p_ref : SMEM f32[21] = [w1(4, row-major), b1(2), w2(4), b2(2), w3(6), b3(3)]
    # x_ref : VMEM f32[2, tile]   (feature-major, batch on the lane axis)
    x0 = x_ref[0:1, :]
    x1 = x_ref[1:2, :]

    # layer1: Linear(2,2) + ReLU     h[j] = x0*w[j,0] + x1*w[j,1] + b[j]
    h1_0 = jnp.maximum(x0 * p_ref[0] + x1 * p_ref[1] + p_ref[4], 0.0)
    h1_1 = jnp.maximum(x0 * p_ref[2] + x1 * p_ref[3] + p_ref[5], 0.0)

    # layer2: Linear(2,2) + ReLU
    h2_0 = jnp.maximum(h1_0 * p_ref[6] + h1_1 * p_ref[7] + p_ref[10], 0.0)
    h2_1 = jnp.maximum(h1_0 * p_ref[8] + h1_1 * p_ref[9] + p_ref[11], 0.0)

    # layer3: Linear(2,3)
    s0 = h2_0 * p_ref[12] + h2_1 * p_ref[13] + p_ref[18]
    s1 = h2_0 * p_ref[14] + h2_1 * p_ref[15] + p_ref[19]
    s2 = h2_0 * p_ref[16] + h2_1 * p_ref[17] + p_ref[20]

    # direct lane-dense per-class row stores (no jnp.concatenate)
    scores_ref[0:1, :] = s0
    scores_ref[1:2, :] = s1
    scores_ref[2:3, :] = s2

    # argmax over 3 classes, first occurrence on ties (torch.max semantics),
    # as an unrolled VPU compare/select chain; emitted directly as int32.
    # TODO(synk): NaN scores fall through to class 2 here, unlike torch.max.
    preds_ref[...] = jnp.where(
        (s0 >= s1) & (s0 >= s2),
        jnp.int32(0),
        jnp.where(s1 >= s2, jnp.int32(1), jnp.int32(2)),
    )


def three_layer_net(x, w1, b1, w2, b2, w3, b3, *, tile=None):
    """x: (B, 2) float32. Returns (scores (B, 3) f32, predictions (B,) int32)."""
    B = x.shape[0]
    if tile is None or tile >= B:
        tile = B                       # single full-extent block (any B allowed)
    else:
        assert tile % 128 == 0, "partial batch tiles must be 128-lane aligned"
    n_tiles = pl.cdiv(B, tile)         # ragged tail handled by masked edge block

    # feature-major / batch-on-lanes layout (one cheap wrapper transpose)
    x_t = x.astype(jnp.float32).T      # (2, B)

    # pack all parameters (PyTorch row-major weight order) into one array;
    # scalar-prefetched into SMEM once before the grid runs.
    params = jnp.concatenate([
        w1.reshape(-1), b1.reshape(-1),
        w2.reshape(-1), b2.reshape(-1),
        w3.reshape(-1), b3.reshape(-1),
    ]).astype(jnp.float32)             # (21,)

    grid_spec = pltpu.PrefetchScalarGridSpec(
        num_scalar_prefetch=1,
        grid=(n_tiles,),
        in_specs=[pl.BlockSpec((2, tile), lambda i, p: (0, i))],
        out_specs=[
            pl.BlockSpec((3, tile), lambda i, p: (0, i)),
            pl.BlockSpec((1, tile), lambda i, p: (0, i)),
        ],
    )

    scores_t, preds_t = pl.pallas_call(
        three_layer_kernel,
        grid_spec=grid_spec,
        out_shape=(
            jax.ShapeDtypeStruct((3, B), jnp.float32),
            jax.ShapeDtypeStruct((1, B), jnp.int32),
        ),
        compiler_params=pltpu.CompilerParams(
            dimension_semantics=("parallel",)),  # shards tiles across v7x's 2 TCs
    )(params, x_t)

    return scores_t.T, preds_t[0]


def make_params(delta=0.001):
    """Deterministic init matching ThreeLayerNet.init(): row-major increasing
    values in steps of `delta` over (w1, b1, w2, b2, w3, b3)."""
    shapes = [(2, 2), (2,), (2, 2), (2,), (3, 2), (3,)]
    params = []
    count = 0
    for shp in shapes:
        n = 1
        for s in shp:
            n *= s
        vals = (jnp.arange(1, n + 1, dtype=jnp.float32) + count) * delta
        count += n
        params.append(vals.reshape(shp))
    return tuple(params)


def _reference(x, w1, b1, w2, b2, w3, b3):
    h1 = jnp.maximum(x @ w1.T + b1, 0.0)
    h2 = jnp.maximum(h1 @ w2.T + b2, 0.0)
    scores = h2 @ w3.T + b3
    return scores, jnp.argmax(scores, axis=1).astype(jnp.int32)


if __name__ == "__main__":
    key = jax.random.PRNGKey(0)
    w1, b1, w2, b2, w3, b3 = make_params()

    # (batch, tile): tiny single block; multi-tile aligned; ragged tail.
    cases = [(8, None), (512, 128), (200, 128)]
    for B, tile in cases:
        key, sub = jax.random.split(key)
        x = jax.random.normal(sub, (B, 2), dtype=jnp.float32)

        scores, preds = three_layer_net(x, w1, b1, w2, b2, w3, b3, tile=tile)
        jax.block_until_ready((scores, preds))

        ref_scores, ref_preds = _reference(x, w1, b1, w2, b2, w3, b3)
        assert scores.shape == (B, 3) and preds.shape == (B,)
        assert jnp.allclose(scores, ref_scores, atol=1e-5, rtol=1e-5), \
            f"scores mismatch (B={B}, tile={tile})"
        assert jnp.array_equal(preds, ref_preds), \
            f"prediction mismatch (B={B}, tile={tile})"

    print("KERNEL_OK")
</pallas_src>

<mosaic_0001>
module attributes {stable_mosaic.version = 11 : i64} {
  func.func @three_layer_kernel(%arg0: i32, %arg1: memref<21xf32, #tpu.memory_space<smem>>, %arg2: memref<2x8xf32, #tpu.memory_space<vmem>>, %arg3: memref<3x8xf32, #tpu.memory_space<vmem>>, %arg4: memref<1x8xi32, #tpu.memory_space<vmem>>) attributes {dimension_semantics = [#tpu.dimension_semantics<parallel>], iteration_bounds = array<i64: 1>, scalar_prefetch = 1 : i64, scratch_operands = 0 : i64, tpu.core_type = #tpu.core_type<tc>, window_params = [{transform_indices = @transform_0, window_bounds = array<i64: 2, 8>}, {transform_indices = @transform_1, window_bounds = array<i64: 3, 8>}, {transform_indices = @transform_2, window_bounds = array<i64: 1, 8>}]} {
    %c0 = arith.constant 0 : index
    %c0_0 = arith.constant 0 : index
    %0 = vector.load %arg2[%c0, %c0_0] : memref<2x8xf32, #tpu.memory_space<vmem>>, vector<1x8xf32>
    %c1 = arith.constant 1 : index
    %c0_1 = arith.constant 0 : index
    %1 = vector.load %arg2[%c1, %c0_1] : memref<2x8xf32, #tpu.memory_space<vmem>>, vector<1x8xf32>
    %c0_2 = arith.constant 0 : index
    %2 = memref.load %arg1[%c0_2] : memref<21xf32, #tpu.memory_space<smem>>
    %3 = vector.broadcast %2 : f32 to vector<1x8xf32>
    %4 = arith.mulf %0, %3 : vector<1x8xf32>
    %c1_3 = arith.constant 1 : index
    %5 = memref.load %arg1[%c1_3] : memref<21xf32, #tpu.memory_space<smem>>
    %6 = vector.broadcast %5 : f32 to vector<1x8xf32>
    %7 = arith.mulf %1, %6 : vector<1x8xf32>
    %8 = arith.addf %4, %7 : vector<1x8xf32>
    %c4 = arith.constant 4 : index
    %9 = memref.load %arg1[%c4] : memref<21xf32, #tpu.memory_space<smem>>
    %10 = vector.broadcast %9 : f32 to vector<1x8xf32>
    %11 = arith.addf %8, %10 : vector<1x8xf32>
    %cst = arith.constant 0.000000e+00 : f32
    %12 = vector.broadcast %cst : f32 to vector<1x8xf32>
    %13 = arith.maximumf %11, %12 : vector<1x8xf32>
    %c2 = arith.constant 2 : index
    %14 = memref.load %arg1[%c2] : memref<21xf32, #tpu.memory_space<smem>>
    %15 = vector.broadcast %14 : f32 to vector<1x8xf32>
    %16 = arith.mulf %0, %15 : vector<1x8xf32>
    %c3 = arith.constant 3 : index
    %17 = memref.load %arg1[%c3] : memref<21xf32, #tpu.memory_space<smem>>
    %18 = vector.broadcast %17 : f32 to vector<1x8xf32>
    %19 = arith.mulf %1, %18 : vector<1x8xf32>
    %20 = arith.addf %16, %19 : vector<1x8xf32>
    %c5 = arith.constant 5 : index
    %21 = memref.load %arg1[%c5] : memref<21xf32, #tpu.memory_space<smem>>
    %22 = vector.broadcast %21 : f32 to vector<1x8xf32>
    %23 = arith.addf %20, %22 : vector<1x8xf32>
    %cst_4 = arith.constant 0.000000e+00 : f32
    %24 = vector.broadcast %cst_4 : f32 to vector<1x8xf32>
    %25 = arith.maximumf %23, %24 : vector<1x8xf32>
    %c6 = arith.constant 6 : index
    %26 = memref.load %arg1[%c6] : memref<21xf32, #tpu.memory_space<smem>>
    %27 = vector.broadcast %26 : f32 to vector<1x8xf32>
    %28 = arith.mulf %13, %27 : vector<1x8xf32>
    %c7 = arith.constant 7 : index
    %29 = memref.load %arg1[%c7] : memref<21xf32, #tpu.memory_space<smem>>
    %30 = vector.broadcast %29 : f32 to vector<1x8xf32>
    %31 = arith.mulf %25, %30 : vector<1x8xf32>
    %32 = arith.addf %28, %31 : vector<1x8xf32>
    %c10 = arith.constant 10 : index
    %33 = memref.load %arg1[%c10] : memref<21xf32, #tpu.memory_space<smem>>
    %34 = vector.broadcast %33 : f32 to vector<1x8xf32>
    %35 = arith.addf %32, %34 : vector<1x8xf32>
    %cst_5 = arith.constant 0.000000e+00 : f32
    %36 = vector.broadcast %cst_5 : f32 to vector<1x8xf32>
    %37 = arith.maximumf %35, %36 : vector<1x8xf32>
    %c8 = arith.constant 8 : index
    %38 = memref.load %arg1[%c8] : memref<21xf32, #tpu.memory_space<smem>>
    %39 = vector.broadcast %38 : f32 to vector<1x8xf32>
    %40 = arith.mulf %13, %39 : vector<1x8xf32>
    %c9 = arith.constant 9 : index
    %41 = memref.load %arg1[%c9] : memref<21xf32, #tpu.memory_space<smem>>
    %42 = vector.broadcast %41 : f32 to vector<1x8xf32>
    %43 = arith.mulf %25, %42 : vector<1x8xf32>
    %44 = arith.addf %40, %43 : vector<1x8xf32>
    %c11 = arith.constant 11 : index
    %45 = memref.load %arg1[%c11] : memref<21xf32, #tpu.memory_space<smem>>
    %46 = vector.broadcast %45 : f32 to vector<1x8xf32>
    %47 = arith.addf %44, %46 : vector<1x8xf32>
    %cst_6 = arith.constant 0.000000e+00 : f32
    %48 = vector.broadcast %cst_6 : f32 to vector<1x8xf32>
    %49 = arith.maximumf %47, %48 : vector<1x8xf32>
    %c12 = arith.constant 12 : index
    %50 = memref.load %arg1[%c12] : memref<21xf32, #tpu.memory_space<smem>>
    %51 = vector.broadcast %50 : f32 to vector<1x8xf32>
    %52 = arith.mulf %37, %51 : vector<1x8xf32>
    %c13 = arith.constant 13 : index
    %53 = memref.load %arg1[%c13] : memref<21xf32, #tpu.memory_space<smem>>
    %54 = vector.broadcast %53 : f32 to vector<1x8xf32>
    %55 = arith.mulf %49, %54 : vector<1x8xf32>
    %56 = arith.addf %52, %55 : vector<1x8xf32>
    %c18 = arith.constant 18 : index
    %57 = memref.load %arg1[%c18] : memref<21xf32, #tpu.memory_space<smem>>
    %58 = vector.broadcast %57 : f32 to vector<1x8xf32>
    %59 = arith.addf %56, %58 : vector<1x8xf32>
    %c14 = arith.constant 14 : index
    %60 = memref.load %arg1[%c14] : memref<21xf32, #tpu.memory_space<smem>>
    %61 = vector.broadcast %60 : f32 to vector<1x8xf32>
    %62 = arith.mulf %37, %61 : vector<1x8xf32>
    %c15 = arith.constant 15 : index
    %63 = memref.load %arg1[%c15] : memref<21xf32, #tpu.memory_space<smem>>
    %64 = vector.broadcast %63 : f32 to vector<1x8xf32>
    %65 = arith.mulf %49, %64 : vector<1x8xf32>
    %66 = arith.addf %62, %65 : vector<1x8xf32>
    %c19 = arith.constant 19 : index
    %67 = memref.load %arg1[%c19] : memref<21xf32, #tpu.memory_space<smem>>
    %68 = vector.broadcast %67 : f32 to vector<1x8xf32>
    %69 = arith.addf %66, %68 : vector<1x8xf32>
    %c16 = arith.constant 16 : index
    %70 = memref.load %arg1[%c16] : memref<21xf32, #tpu.memory_space<smem>>
    %71 = vector.broadcast %70 : f32 to vector<1x8xf32>
    %72 = arith.mulf %37, %71 : vector<1x8xf32>
    %c17 = arith.constant 17 : index
    %73 = memref.load %arg1[%c17] : memref<21xf32, #tpu.memory_space<smem>>
    %74 = vector.broadcast %73 : f32 to vector<1x8xf32>
    %75 = arith.mulf %49, %74 : vector<1x8xf32>
    %76 = arith.addf %72, %75 : vector<1x8xf32>
    %c20 = arith.constant 20 : index
    %77 = memref.load %arg1[%c20] : memref<21xf32, #tpu.memory_space<smem>>
    %78 = vector.broadcast %77 : f32 to vector<1x8xf32>
    %79 = arith.addf %76, %78 : vector<1x8xf32>
    %c0_7 = arith.constant 0 : index
    %c0_8 = arith.constant 0 : index
    %80 = vector.load %arg3[%c0_7, %c0_8] : memref<3x8xf32, #tpu.memory_space<vmem>>, vector<1x8xf32>
    tpu.vector_store %arg3[%c0_7, %c0_8], %59 {strides = array<i32>} : memref<3x8xf32, #tpu.memory_space<vmem>>, vector<1x8xf32>,
    %c1_9 = arith.constant 1 : index
    %c0_10 = arith.constant 0 : index
    %81 = vector.load %arg3[%c1_9, %c0_10] : memref<3x8xf32, #tpu.memory_space<vmem>>, vector<1x8xf32>
    tpu.vector_store %arg3[%c1_9, %c0_10], %69 {strides = array<i32>} : memref<3x8xf32, #tpu.memory_space<vmem>>, vector<1x8xf32>,
    %c2_11 = arith.constant 2 : index
    %c0_12 = arith.constant 0 : index
    %82 = vector.load %arg3[%c2_11, %c0_12] : memref<3x8xf32, #tpu.memory_space<vmem>>, vector<1x8xf32>
    tpu.vector_store %arg3[%c2_11, %c0_12], %79 {strides = array<i32>} : memref<3x8xf32, #tpu.memory_space<vmem>>, vector<1x8xf32>,
    %83 = arith.cmpf oge, %59, %69 : vector<1x8xf32>
    %84 = arith.cmpf oge, %59, %79 : vector<1x8xf32>
    %85 = arith.andi %83, %84 : vector<1x8xi1>
    %86 = arith.cmpf oge, %69, %79 : vector<1x8xf32>
    %c1_i32 = arith.constant 1 : i32
    %c2_i32 = arith.constant 2 : i32
    %87 = vector.broadcast %c1_i32 : i32 to vector<1x8xi32>
    %88 = vector.broadcast %c2_i32 : i32 to vector<1x8xi32>
    %89 = arith.select %86, %87, %88 : vector<1x8xi1>, vector<1x8xi32>
    %c0_i32 = arith.constant 0 : i32
    %90 = vector.broadcast %c0_i32 : i32 to vector<1x8xi32>
    %91 = arith.select %85, %90, %89 : vector<1x8xi1>, vector<1x8xi32>
    %c0_13 = arith.constant 0 : index
    %c0_14 = arith.constant 0 : index
    %92 = vector.load %arg4[%c0_13, %c0_14] : memref<1x8xi32, #tpu.memory_space<vmem>>, vector<1x8xi32>
    tpu.vector_store %arg4[%c0_13, %c0_14], %91 {strides = array<i32>} : memref<1x8xi32, #tpu.memory_space<vmem>>, vector<1x8xi32>,
    return
  }
  func.func @transform_0(%arg0: i32, %arg1: memref<21xf32, #tpu.memory_space<smem>>) -> (i32, i32) {
    %c0_i32 = arith.constant 0 : i32
    %c0_i32_0 = arith.constant 0 : i32
    return %c0_i32, %arg0 : i32, i32
  }
  func.func @transform_1(%arg0: i32, %arg1: memref<21xf32, #tpu.memory_space<smem>>) -> (i32, i32) {
    %c0_i32 = arith.constant 0 : i32
    %c0_i32_0 = arith.constant 0 : i32
    return %c0_i32, %arg0 : i32, i32
  }
  func.func @transform_2(%arg0: i32, %arg1: memref<21xf32, #tpu.memory_space<smem>>) -> (i32, i32) {
    %c0_i32 = arith.constant 0 : i32
    %c0_i32_0 = arith.constant 0 : i32
    return %c0_i32, %arg0 : i32, i32
  }
}

</mosaic_0001>

<bundles_post_ra>
// kernel: tpu_custom_call.1
= control target key start
LH: loop header
LB: loop body
LE: loop exit
PB: predicated region body
PF: predicated region fallthrough
CT: control target
= control target key end

     0   :  { %s321_s0 = inlined_call_operand.hbm [shape: f32[21], index: 0, kind: input, shape index: {}]   ;;  %s322_s1 = inlined_call_operand.vmem [shape: f32[2,8], index: 1, kind: input, shape index: {}]   ;;  %s323_s2 = inlined_call_operand.hbm [shape: f32[3,8], index: 2, kind: output, shape index: {0}]   ;;  %s324_s3 = inlined_call_operand.hbm [shape: s32[1,8], index: 3, kind: output, shape index: {1}]  }
   0x1   :  { %s156_s14 = scalar_lea.hbm %s321_s0, 16 }
   0x2   :  { %p157_p0 = scmp.ne.s32.totalorder %s321_s0, %s156_s14  ;;  %p160_p1 = scmp.lt.u32.totalorder %s156_s14, %s321_s0 }
   0x4   :  { %p162_p2 = pnand %p160_p1, %p157_p0 }
   0x6   :  { %165 = shalt.err (!%p162_p2)  }
   0x7   :  { %s216_s19 = smov [#allocation3]  }
   0x8   :  { %10 = dma.hbm_to_smem %s321_s0, 16, %s216_s19, [#allocation2] }
   0x9   :  { %210 = dma.done.wait [#allocation2], 16 }
   0xa   :  { %211 = vsyncadd [#allocation2], 4294967280 }
   0xb   :  { %12 = sfence }
   0xc   :  { %13 = vsyncpa [#allocation5], 0  ;;  %s19_s22 = sld [smem:[#allocation3]]  ;;  %s132_s23 = sld [smem:[#allocation3 + $0x1]] }
   0xd   :  { %s133_s24 = sld [smem:[#allocation3 + $0x4]]  ;;  %s134_s25 = sld [smem:[#allocation3 + $0x2]] }
   0xe   :  { %s135_s26 = sld [smem:[#allocation3 + $0x3]] }
   0xf   :  { %14 = vsyncpa [#allocation7], 0  ;;  %s136_s27 = sld [smem:[#allocation3 + $0x5]]  ;;  %v17_v0 = vld [vmem:[%s322_s1] sm:$0x1]  ;;  %s258_s0 = sld [smem:[#allocation3 + $0x6]] }
  0x10   :  { %v18_v1 = vld [vmem:[%s322_s1 + $0x1] sm:$0x1]  ;;  %s260_s5 = sld [smem:[#allocation3 + $0x8]]  ;;  %s262_s6 = sld [smem:[#allocation3 + $0x7]]  ;;  %vm93_vm0 = vcmask 57344   ;;  %v219_v56 = vmov 2  }
  0x11   :  { %s264_s7 = sld [smem:[#allocation3 + $0x9]]  ;;  %s139_s1 = sld [smem:[#allocation3 + $0xa]] }
  0x12   :  { %v20_v2 = vstv %s19_s22  ;;  %v23_v4 = vstv %s132_s23  ;;  %s142_s8 = sld [smem:[#allocation3 + $0xb]]  ;;  %s268_s9 = sld [smem:[#allocation3 + $0xc]] }
  0x13   :  { %v21_v3 = vmul.f32 %v20_v2, %v17_v0  ;;  %v24_v5 = vmul.f32 %v23_v4, %v18_v1  ;;  %v31_v6 = vstv %s134_s25  ;;  %v27_v8 = vstv %s133_s24  ;;  %s270_s10 = sld [smem:[#allocation3 + $0xd]]  ;;  %s146_s11 = sld [smem:[#allocation3 + $0xe]] }
  0x14   :  { %v34_v7 = vstv %s135_s26  ;;  %v32_v9 = vmul.f32 %v31_v6, %v17_v0  ;;  %s147_s12 = sld [smem:[#allocation3 + $0xf]]  ;;  %s149_s13 = sld [smem:[#allocation3 + $0x10]] }
  0x15   :  { %v35_v10 = vmul.f32 %v34_v7, %v18_v1  ;;  %v25_v11 = vadd.f32 %v24_v5, %v21_v3  ;;  %v38_v12 = vstv %s136_s27  ;;  %v42_v16 = vstv %s258_s0  ;;  %s150_s14 = sld [smem:[#allocation3 + $0x11]]  ;;  %s145_s15 = sld [smem:[#allocation3 + $0x12]] }
  0x16   :  { %v53_v17 = vstv %s260_s5  ;;  %v45_v19 = vstv %s262_s6  ;;  %s148_s16 = sld [smem:[#allocation3 + $0x13]]  ;;  %s274_s17 = sld [smem:[#allocation3 + $0x14]] }
  0x17   :  { %v36_v13 = vadd.f32 %v35_v10, %v32_v9  ;;  %v28_v14 = vadd.f32 %v27_v8, %v25_v11  ;;  %v56_v20 = vstv %s264_s7  ;;  %v49_v26 = vstv %s139_s1  ;;  %s217_s18 = smov [#allocation4]   ;;  %s218_s20 = smov [#allocation6]  }
  0x18   :  { %v60_v27 = vstv %s142_s8  ;;  %v64_v32 = vstv %s268_s9  ;;  %s110_s19 = sshll.u32 %s217_s18, 4  ;;  %s120_s21 = sshll.u32 %s218_s20, 4  ;;  %s111_s19 = int_to_ptr.vmem [resolvable:$true] %s110_s19  ;;  %s282_s21 = int_to_ptr.vmem [resolvable:$true] %s120_s21 }
  0x19   :  { %v39_v15 = vadd.f32 %v38_v12, %v36_v13  ;;  %v29_v18 = vmax.f32 %v28_v14, 0.0  ;;  %v67_v33 = vstv %s270_s10  ;;  %v74_v34 = vstv %s146_s11  ;;  %s166_s22 = scalar_lea.vmem %s111_s19, 64  ;;  %p171_p4 = scmp.lt.s32.totalorder %s111_s19, %s111_s19 }
  0x1a   :  { %v77_v35 = vstv %s147_s12  ;;  %v84_v38 = vstv %s149_s13  ;;  %p167_p3 = scmp.ne.s32.totalorder %s111_s19, %s166_s22  ;;  %p172_p5 = scmp.lt.s32.totalorder %s166_s22, %s166_s22 }
  0x1b   :  { %v40_v21 = vmax.f32 %v39_v15, 0.0  ;;  %v43_v22 = vmul.f32 %v42_v16, %v29_v18  ;;  %v54_v23 = vmul.f32 %v53_v17, %v29_v18  ;;  %v87_v39 = vstv %s150_s14 }
  0x1c   :  { %v71_v44 = vstv %s145_s15  ;;  %v81_v45 = vstv %s148_s16  ;;  %v91_v50 = vstv %s274_s17  ;;  %p173_p6 = por %p172_p5, %p171_p4 }
  0x1d   :  { %v46_v24 = vmul.f32 %v45_v19, %v40_v21  ;;  %v57_v25 = vmul.f32 %v56_v20, %v40_v21 }
  0x1e   :  { %p174_p7 = pnand %p173_p6, %p167_p3 }
  0x1f   :  { %v47_v28 = vadd.f32 %v46_v24, %v43_v22  ;;  %v58_v29 = vadd.f32 %v57_v25, %v54_v23 }
  0x21   :  { %v50_v30 = vadd.f32 %v49_v26, %v47_v28  ;;  %v61_v31 = vadd.f32 %v60_v27, %v58_v29 }
  0x23   :  { %v51_v36 = vmax.f32 %v50_v30, 0.0  ;;  %v62_v37 = vmax.f32 %v61_v31, 0.0 }
  0x25   :  { %v65_v40 = vmul.f32 %v64_v32, %v51_v36  ;;  %v68_v41 = vmul.f32 %v67_v33, %v62_v37  ;;  %v75_v42 = vmul.f32 %v74_v34, %v51_v36  ;;  %v78_v43 = vmul.f32 %v77_v35, %v62_v37 }
  0x26   :  { %v85_v46 = vmul.f32 %v84_v38, %v51_v36  ;;  %v88_v47 = vmul.f32 %v87_v39, %v62_v37 }
  0x27   :  { %v69_v48 = vadd.f32 %v68_v41, %v65_v40  ;;  %v79_v49 = vadd.f32 %v78_v43, %v75_v42 }
  0x28   :  { %v89_v51 = vadd.f32 %v88_v47, %v85_v46 }
  0x29   :  { %v72_v52 = vadd.f32 %v71_v44, %v69_v48  ;;  %v82_v53 = vadd.f32 %v81_v45, %v79_v49 }
  0x2a   :  { %v92_v54 = vadd.f32 %v91_v50, %v89_v51 }
  0x2b   :  { %94 = vst.msk [vmem:[#allocation4] sm:$0x1] %vm93_vm0, %v72_v52  ;;  %95 = vst.msk [vmem:[#allocation4 + $0x1] sm:$0x1] %vm93_vm0, %v82_v53  ;;  %vm97_vm1 = vcmp.ge.f32.partialorder %v72_v52, %v82_v53 }
  0x2c   :  { %96 = vst.msk [vmem:[#allocation4 + $0x2] sm:$0x1] %vm93_vm0, %v92_v54  ;;  %vm98_vm2 = vcmp.ge.f32.partialorder %v72_v52, %v92_v54  ;;  %vm100_vm3 = vcmp.ge.f32.partialorder %v82_v53, %v92_v54 }
  0x2d   :  { %vm284_vm4 = vmand %vm97_vm1, %vm98_vm2  ;;  %v101_v57 = vsel %vm100_vm3, 1, %v219_v56 }
  0x2e   :  { %177 = shalt.err (!%p174_p7)
}
  0x2f   :  { %s178_s25 = scalar_lea.hbm %s323_s2, 64 }
  0x30   :  { %p179_p8 = scmp.ne.s32.totalorder %s323_s2, %s178_s25  ;;  %p182_p9 = scmp.lt.u32.totalorder %s178_s25, %s323_s2 }
  0x32   :  { %p184_p10 = pnand %p182_p9, %p179_p8 }
  0x34   :  { %187 = shalt.err (!%p184_p10)
}
  0x35   :  { %113 = dma.vmem_to_hbm [thread:$0]  %s111_s19, 64, %s323_s2, [#allocation5]   ;;  %v102_v58 = vsel %vm284_vm4, 0, %v101_v57 }
  0x36   :  { %103 = vst.msk [vmem:[#allocation6] sm:$0x1] %vm93_vm0, %v102_v58  ;;  %s188_s0 = scalar_lea.vmem %s282_s21, 16  ;;  %s192_s5 = scalar_lea.vmem %s282_s21, 32 }
  0x37   :  { %p189_p11 = scmp.ne.s32.totalorder %s282_s21, %s188_s0  ;;  %p193_p12 = scmp.lt.s32.totalorder %s282_s21, %s282_s21 }
  0x38   :  { %p194_p13 = scmp.lt.s32.totalorder %s192_s5, %s188_s0 }
  0x3a   :  { %p195_p0 = por %p194_p13, %p193_p12 }
  0x3c   :  { %p196_p1 = pnand %p195_p0, %p189_p11 }
  0x3e   :  { %199 = shalt.err (!%p196_p1)
}
  0x3f   :  { %s200_s1 = scalar_lea.hbm %s324_s3, 16 }
  0x40   :  { %p201_p2 = scmp.ne.s32.totalorder %s324_s3, %s200_s1  ;;  %p204_p3 = scmp.lt.u32.totalorder %s200_s1, %s324_s3 }
  0x42   :  { %p206_p4 = pnand %p204_p3, %p201_p2 }
  0x44   :  { %209 = shalt.err (!%p206_p4)
}
  0x45   :  { %123 = dma.vmem_to_hbm [thread:$0]  %s282_s21, 16, %s324_s3, [#allocation7]  }
  0x46   :  { %212 = dma.done.wait [#allocation5], 64  }
  0x47   :  { %213 = vsyncadd [#allocation5], 4294967232 }
  0x48   :  { %214 = dma.done.wait [#allocation7], 16  }
  0x49   :  { %215 = vsyncadd [#allocation7], 4294967280 }
  0x4a   :  { %130 = vsyncpa [#allocation5], 1 }
  0x4b   :  { %131 = vsyncpa [#allocation7], 1 }

</bundles_post_ra>
